<compile_context>
chip_gen: v6e
topology: v6e:2x2x1
jax: 0.10.0
libtpu: 0.0.40
codegen_flags: <defaults>
</compile_context>

<pallas_src>
import jax
import jax.numpy as jnp
from jax import lax
from jax.experimental import pallas as pl
from jax.experimental.pallas import tpu as pltpu


def _lstm_kernel(tile_max_ref, x_ref, lens_ref, wih_ref, whh_ref, b_ref,
                 out_ref, xw_ref):
    # x_ref:    (T*Bt, D)    tile-local, time-major rows: row t*Bt + r == x[user r, t]
    # lens_ref: (Bt, 1)      int32 per-user sequence lengths (0 for padding rows)
    # wih_ref:  (D, 4*Hp)    input->gate weights; gate k occupies cols [k*Hp, k*Hp+H)
    # whh_ref:  (Hp, 4*Hp)   hidden->gate weights (rows >= H are zero)
    # b_ref:    (1, 4*Hp)    b_ih + b_hh, gate-padded
    # out_ref:  (Bt, Hp)     final hidden state per user (cols >= H are zero)
    # xw_ref:   (T*Bt, 4*Hp) f32 scratch: hoisted input projection (+bias)
    Bt, Hp = out_ref.shape
    TBt = x_ref.shape[0]
    T = TBt // Bt
    tile = pl.program_id(0)

    # Hoisted input projection for every timestep: one big MXU matmul instead of
    # one (1, D) @ (D, 4H) push per step on the serial recurrence path.
    xw_ref[...] = (jnp.dot(x_ref[...].astype(jnp.float32), wih_ref[...],
                           preferred_element_type=jnp.float32)
                   + b_ref[...])

    whh = whh_ref[...]
    lens = lens_ref[...]                      # (Bt, 1) int32

    def cell(xw_t, h, c):
        # PyTorch gate order i, f, g, o; each gate is a full Hp-lane slab.
        gates = xw_t + jnp.dot(h, whh, preferred_element_type=jnp.float32)
        i = jax.nn.sigmoid(gates[:, 0 * Hp:1 * Hp])
        f = jax.nn.sigmoid(gates[:, 1 * Hp:2 * Hp])
        g = jnp.tanh(gates[:, 2 * Hp:3 * Hp])
        o = jax.nn.sigmoid(gates[:, 3 * Hp:4 * Hp])
        c_new = f * c + i * g
        h_new = o * jnp.tanh(c_new)
        return h_new, c_new

    # Seed step: PyTorch first runs the LSTM on x[:, 0] with zero state and keeps
    # only (h, c); x[:, 0] is then intentionally re-processed at t == 0 below.
    h, c = cell(xw_ref[0:Bt, :],
                jnp.zeros((Bt, Hp), jnp.float32),
                jnp.zeros((Bt, Hp), jnp.float32))

    # Dynamic trip count = max length in this tile, clamped to T (no OOB reads).
    L = jnp.minimum(tile_max_ref[tile], T)

    def body(t, carry):
        h, c = carry
        row0 = pl.multiple_of(t * Bt, Bt)
        xw_t = xw_ref[pl.ds(row0, Bt), :]
        h_new, c_new = cell(xw_t, h, c)
        active = t < lens                     # (Bt, 1) ragged-length row mask
        h = jnp.where(active, h_new, h)
        c = jnp.where(active, c_new, c)
        return h, c

    h, _ = lax.fori_loop(0, L, body, (h, c))
    out_ref[...] = h.astype(out_ref.dtype)


def lstm_forward(user_features, user_lens, w_ih, w_hh, b_ih, b_hh, *, b_tile=8):
    """user_features: (B, T, D); user_lens: (B,) int; PyTorch weight layout:
    w_ih (4H, D), w_hh (4H, H), b_ih/b_hh (4H,). Returns (B, H) final hidden."""
    B, T, D = user_features.shape
    H = w_hh.shape[1]
    Hp = ((H + 127) // 128) * 128           # each gate padded to full 128-lane width
    n_tiles = pl.cdiv(B, b_tile)
    B_pad = n_tiles * b_tile
    f32 = jnp.float32

    # ---- glue (plain XLA, outside the kernel) -------------------------------
    x_pad = jnp.zeros((B_pad, T, D), f32).at[:B].set(user_features.astype(f32))
    # Tile-local, time-major layout: row (t*b_tile + r) of tile n == x[n*b_tile + r, t]
    x_tiled = (x_pad.reshape(n_tiles, b_tile, T, D)
               .transpose(0, 2, 1, 3)
               .reshape(n_tiles, T * b_tile, D))

    lens = jnp.zeros((B_pad,), jnp.int32).at[:B].set(user_lens.astype(jnp.int32))
    lens = jnp.minimum(lens, T)             # matches PyTorch [:user_len] clamping
    lens_col = lens.reshape(B_pad, 1)
    tile_max = jnp.max(lens.reshape(n_tiles, b_tile), axis=1)   # (n_tiles,) int32

    def pad_gate_cols(w):   # (rows, 4H) -> (rows, 4Hp); gate k -> cols [k*Hp, k*Hp+H)
        rows = w.shape[0]
        w4 = w.reshape(rows, 4, H)
        return jnp.zeros((rows, 4, Hp), f32).at[:, :, :H].set(w4).reshape(rows, 4 * Hp)

    wih_p = pad_gate_cols(jnp.transpose(w_ih).astype(f32))                  # (D, 4Hp)
    whh_p = jnp.zeros((Hp, 4 * Hp), f32).at[:H].set(
        pad_gate_cols(jnp.transpose(w_hh).astype(f32)))                     # (Hp, 4Hp)
    bias_p = pad_gate_cols((b_ih + b_hh).astype(f32).reshape(1, 4 * H))     # (1, 4Hp)
    # TODO(synk): at production D/H cast wih_p/whh_p (and x) to bf16 with f32
    # accumulation; kept f32 here to preserve the 1e-4 reference tolerance.

    out = pl.pallas_call(
        _lstm_kernel,
        out_shape=jax.ShapeDtypeStruct((B_pad, Hp), f32),
        grid_spec=pltpu.PrefetchScalarGridSpec(
            num_scalar_prefetch=1,                      # tile_max -> SMEM
            grid=(n_tiles,),
            in_specs=[
                pl.BlockSpec((None, T * b_tile, D), lambda n, tm: (n, 0, 0)),
                pl.BlockSpec((b_tile, 1), lambda n, tm: (n, 0)),
                pl.BlockSpec((D, 4 * Hp), lambda n, tm: (0, 0)),
                pl.BlockSpec((Hp, 4 * Hp), lambda n, tm: (0, 0)),
                pl.BlockSpec((1, 4 * Hp), lambda n, tm: (0, 0)),
            ],
            out_specs=pl.BlockSpec((b_tile, Hp), lambda n, tm: (n, 0)),
            scratch_shapes=[pltpu.VMEM((T * b_tile, 4 * Hp), f32)],
        ),
        compiler_params=pltpu.CompilerParams(
            dimension_semantics=("parallel",),          # user tiles are independent
            vmem_limit_bytes=32 * 1024 * 1024),
    )(tile_max, x_tiled, lens_col, wih_p, whh_p, bias_p)

    return out[:B, :H].astype(user_features.dtype)


def lstm_ref(user_features, user_lens, w_ih, w_hh, b_ih, b_hh):
    """Pure-JAX reference mirroring the PyTorch forward exactly."""
    H = w_hh.shape[1]
    bias = b_ih + b_hh

    def cell(x, h, c):
        gates = x @ w_ih.T + h @ w_hh.T + bias
        i = jax.nn.sigmoid(gates[0:H])
        f = jax.nn.sigmoid(gates[H:2 * H])
        g = jnp.tanh(gates[2 * H:3 * H])
        o = jax.nn.sigmoid(gates[3 * H:4 * H])
        c_new = f * c + i * g
        h_new = o * jnp.tanh(c_new)
        return h_new, c_new

    outs = []
    for b in range(user_features.shape[0]):
        L = min(int(user_lens[b]), user_features.shape[1])
        h = jnp.zeros((H,), jnp.float32)
        c = jnp.zeros((H,), jnp.float32)
        h, c = cell(user_features[b, 0], h, c)       # seed step
        for t in range(L):
            h, c = cell(user_features[b, t], h, c)
        outs.append(h)
    return jnp.stack(outs)


if __name__ == "__main__":
    B, T, D, H = 2, 8, 16, 32      # batch, max seq len, input_size, output_size(hidden)

    key = jax.random.PRNGKey(0)
    k_x, k_wih, k_whh, k_bih, k_bhh = jax.random.split(key, 5)

    user_features = jax.random.normal(k_x, (B, T, D), dtype=jnp.float32)
    user_lens = jnp.array([T, 5], dtype=jnp.int32)

    # Deterministic PyTorch-style LSTM init: U(-1/sqrt(H), 1/sqrt(H)).
    k = 1.0 / jnp.sqrt(jnp.float32(H))
    w_ih = jax.random.uniform(k_wih, (4 * H, D), jnp.float32, -k, k)
    w_hh = jax.random.uniform(k_whh, (4 * H, H), jnp.float32, -k, k)
    b_ih = jax.random.uniform(k_bih, (4 * H,), jnp.float32, -k, k)
    b_hh = jax.random.uniform(k_bhh, (4 * H,), jnp.float32, -k, k)

    out = lstm_forward(user_features, user_lens, w_ih, w_hh, b_ih, b_hh)
    out = jax.block_until_ready(out)

    ref = lstm_ref(user_features, user_lens, w_ih, w_hh, b_ih, b_hh)
    assert out.shape == (B, H)
    assert jnp.allclose(out, ref, rtol=1e-4, atol=1e-4), "mismatch vs pure-JAX reference"

    print("KERNEL_OK")
</pallas_src>

<mosaic_0001>
module attributes {stable_mosaic.version = 11 : i64} {
  func.func @_lstm_kernel(%arg0: i32, %arg1: memref<1xi32, #tpu.memory_space<smem>>, %arg2: memref<1x64x16xf32, #tpu.memory_space<vmem>>, %arg3: memref<8x1xi32, #tpu.memory_space<vmem>>, %arg4: memref<16x512xf32, #tpu.memory_space<vmem>>, %arg5: memref<128x512xf32, #tpu.memory_space<vmem>>, %arg6: memref<1x512xf32, #tpu.memory_space<vmem>>, %arg7: memref<8x128xf32, #tpu.memory_space<vmem>>, %arg8: memref<64x512xf32, #tpu.memory_space<vmem>>) attributes {dimension_semantics = [#tpu.dimension_semantics<parallel>], iteration_bounds = array<i64: 1>, scalar_prefetch = 1 : i64, scratch_operands = 1 : i64, tpu.core_type = #tpu.core_type<tc>, window_params = [{transform_indices = @transform_0, window_bounds = array<i64: 1, 64, 16>}, {transform_indices = @transform_1, window_bounds = array<i64: 8, 1>}, {pipeline_mode = #tpu.pipeline_mode<synchronous>, transform_indices = @transform_2, window_bounds = array<i64: 16, 512>}, {pipeline_mode = #tpu.pipeline_mode<synchronous>, transform_indices = @transform_3, window_bounds = array<i64: 128, 512>}, {pipeline_mode = #tpu.pipeline_mode<synchronous>, transform_indices = @transform_4, window_bounds = array<i64: 1, 512>}, {transform_indices = @transform_5, window_bounds = array<i64: 8, 128>}]} {
    %c0 = arith.constant 0 : index
    %c0_0 = arith.constant 0 : index
    %c0_1 = arith.constant 0 : index
    %0 = vector.load %arg2[%c0, %c0_0, %c0_1] : memref<1x64x16xf32, #tpu.memory_space<vmem>>, vector<1x64x16xf32>
    %1 = vector.shape_cast %0 : vector<1x64x16xf32> to vector<64x16xf32>
    %c0_2 = arith.constant 0 : index
    %c0_3 = arith.constant 0 : index
    %2 = vector.load %arg4[%c0_2, %c0_3] : memref<16x512xf32, #tpu.memory_space<vmem>>, vector<16x512xf32>
    %cst = arith.constant dense<0.000000e+00> : vector<64x512xf32>
    %3 = tpu.matmul %1, %2, %cst {dimension_numbers = #tpu.dot_dimension_numbers<[1], [0], [0], [1], [0, 0, 1, 1], [], []>} : vector<64x16xf32>, vector<16x512xf32>, vector<64x512xf32> -> vector<64x512xf32>
    %c0_4 = arith.constant 0 : index
    %c0_5 = arith.constant 0 : index
    %4 = vector.load %arg6[%c0_4, %c0_5] : memref<1x512xf32, #tpu.memory_space<vmem>>, vector<1x512xf32>
    %5 = vector.broadcast %4 : vector<1x512xf32> to vector<64x512xf32>
    %6 = arith.addf %3, %5 : vector<64x512xf32>
    %c0_6 = arith.constant 0 : index
    %c0_7 = arith.constant 0 : index
    %7 = vector.load %arg8[%c0_6, %c0_7] : memref<64x512xf32, #tpu.memory_space<vmem>>, vector<64x512xf32>
    tpu.vector_store %arg8[%c0_6, %c0_7], %6 {strides = array<i32>} : memref<64x512xf32, #tpu.memory_space<vmem>>, vector<64x512xf32>,
    %c0_8 = arith.constant 0 : index
    %c0_9 = arith.constant 0 : index
    %8 = vector.load %arg5[%c0_8, %c0_9] : memref<128x512xf32, #tpu.memory_space<vmem>>, vector<128x512xf32>
    %c0_10 = arith.constant 0 : index
    %c0_11 = arith.constant 0 : index
    %9 = vector.load %arg3[%c0_10, %c0_11] : memref<8x1xi32, #tpu.memory_space<vmem>>, vector<8x1xi32>
    %c0_12 = arith.constant 0 : index
    %c0_13 = arith.constant 0 : index
    %10 = vector.load %arg8[%c0_12, %c0_13] : memref<64x512xf32, #tpu.memory_space<vmem>>, vector<8x512xf32>
    %cst_14 = arith.constant 0.000000e+00 : f32
    %11 = vector.broadcast %cst_14 : f32 to vector<8x128xf32>
    %cst_15 = arith.constant 0.000000e+00 : f32
    %12 = vector.broadcast %cst_15 : f32 to vector<8x128xf32>
    %cst_16 = arith.constant dense<0.000000e+00> : vector<8x512xf32>
    %13 = tpu.matmul %11, %8, %cst_16 {dimension_numbers = #tpu.dot_dimension_numbers<[1], [0], [0], [1], [0, 0, 1, 1], [], []>} : vector<8x128xf32>, vector<128x512xf32>, vector<8x512xf32> -> vector<8x512xf32>
    %14 = arith.addf %10, %13 : vector<8x512xf32>
    %15 = vector.extract_strided_slice %14 {offsets = [0, 0], sizes = [8, 128], strides = [1, 1]} : vector<8x512xf32> to vector<8x128xf32>
    %16 = arith.negf %15 : vector<8x128xf32>
    %17 = math.exp %16 : vector<8x128xf32>
    %cst_17 = arith.constant 1.000000e+00 : f32
    %18 = vector.broadcast %cst_17 : f32 to vector<8x128xf32>
    %19 = arith.addf %18, %17 : vector<8x128xf32>
    %20 = arith.divf %18, %19 : vector<8x128xf32>
    %21 = vector.extract_strided_slice %14 {offsets = [0, 128], sizes = [8, 128], strides = [1, 1]} : vector<8x512xf32> to vector<8x128xf32>
    %22 = arith.negf %21 : vector<8x128xf32>
    %23 = math.exp %22 : vector<8x128xf32>
    %cst_18 = arith.constant 1.000000e+00 : f32
    %24 = vector.broadcast %cst_18 : f32 to vector<8x128xf32>
    %25 = arith.addf %24, %23 : vector<8x128xf32>
    %26 = arith.divf %24, %25 : vector<8x128xf32>
    %27 = vector.extract_strided_slice %14 {offsets = [0, 256], sizes = [8, 128], strides = [1, 1]} : vector<8x512xf32> to vector<8x128xf32>
    %28 = math.tanh %27 : vector<8x128xf32>
    %29 = vector.extract_strided_slice %14 {offsets = [0, 384], sizes = [8, 128], strides = [1, 1]} : vector<8x512xf32> to vector<8x128xf32>
    %30 = arith.negf %29 : vector<8x128xf32>
    %31 = math.exp %30 : vector<8x128xf32>
    %cst_19 = arith.constant 1.000000e+00 : f32
    %32 = vector.broadcast %cst_19 : f32 to vector<8x128xf32>
    %33 = arith.addf %32, %31 : vector<8x128xf32>
    %34 = arith.divf %32, %33 : vector<8x128xf32>
    %35 = arith.mulf %26, %12 : vector<8x128xf32>
    %36 = arith.mulf %20, %28 : vector<8x128xf32>
    %37 = arith.addf %35, %36 : vector<8x128xf32>
    %38 = math.tanh %37 : vector<8x128xf32>
    %39 = arith.mulf %34, %38 : vector<8x128xf32>
    %40 = arith.index_cast %arg0 : i32 to index
    %41 = memref.load %arg1[%40] : memref<1xi32, #tpu.memory_space<smem>>
    %c8_i32 = arith.constant 8 : i32
    %42 = arith.minsi %41, %c8_i32 : i32
    %c0_i32 = arith.constant 0 : i32
    %43 = arith.subi %42, %c0_i32 : i32
    %44 = arith.addi %c0_i32, %43 : i32
    %c1_i32 = arith.constant 1 : i32
    %45:2 = scf.for %arg9 = %c0_i32 to %44 step %c1_i32 iter_args(%arg10 = %39, %arg11 = %37) -> (vector<8x128xf32>, vector<8x128xf32>)  : i32 {
      %c8_i32_22 = arith.constant 8 : i32
      %47 = arith.muli %arg9, %c8_i32_22 : i32
      %48 = tpu.assume_multiple %47, 8 : i32
      %49 = arith.index_cast %48 : i32 to index
      %c0_23 = arith.constant 0 : index
      %50 = vector.load %arg8[%49, %c0_23] : memref<64x512xf32, #tpu.memory_space<vmem>>, vector<8x512xf32>
      %cst_24 = arith.constant dense<0.000000e+00> : vector<8x512xf32>
      %51 = tpu.matmul %arg10, %8, %cst_24 {dimension_numbers = #tpu.dot_dimension_numbers<[1], [0], [0], [1], [0, 0, 1, 1], [], []>} : vector<8x128xf32>, vector<128x512xf32>, vector<8x512xf32> -> vector<8x512xf32>
      %52 = arith.addf %50, %51 : vector<8x512xf32>
      %53 = vector.extract_strided_slice %52 {offsets = [0, 0], sizes = [8, 128], strides = [1, 1]} : vector<8x512xf32> to vector<8x128xf32>
      %54 = arith.negf %53 : vector<8x128xf32>
      %55 = math.exp %54 : vector<8x128xf32>
      %cst_25 = arith.constant 1.000000e+00 : f32
      %56 = vector.broadcast %cst_25 : f32 to vector<8x128xf32>
      %57 = arith.addf %56, %55 : vector<8x128xf32>
      %58 = arith.divf %56, %57 : vector<8x128xf32>
      %59 = vector.extract_strided_slice %52 {offsets = [0, 128], sizes = [8, 128], strides = [1, 1]} : vector<8x512xf32> to vector<8x128xf32>
      %60 = arith.negf %59 : vector<8x128xf32>
      %61 = math.exp %60 : vector<8x128xf32>
      %cst_26 = arith.constant 1.000000e+00 : f32
      %62 = vector.broadcast %cst_26 : f32 to vector<8x128xf32>
      %63 = arith.addf %62, %61 : vector<8x128xf32>
      %64 = arith.divf %62, %63 : vector<8x128xf32>
      %65 = vector.extract_strided_slice %52 {offsets = [0, 256], sizes = [8, 128], strides = [1, 1]} : vector<8x512xf32> to vector<8x128xf32>
      %66 = math.tanh %65 : vector<8x128xf32>
      %67 = vector.extract_strided_slice %52 {offsets = [0, 384], sizes = [8, 128], strides = [1, 1]} : vector<8x512xf32> to vector<8x128xf32>
      %68 = arith.negf %67 : vector<8x128xf32>
      %69 = math.exp %68 : vector<8x128xf32>
      %cst_27 = arith.constant 1.000000e+00 : f32
      %70 = vector.broadcast %cst_27 : f32 to vector<8x128xf32>
      %71 = arith.addf %70, %69 : vector<8x128xf32>
      %72 = arith.divf %70, %71 : vector<8x128xf32>
      %73 = arith.mulf %64, %arg11 : vector<8x128xf32>
      %74 = arith.mulf %58, %66 : vector<8x128xf32>
      %75 = arith.addf %73, %74 : vector<8x128xf32>
      %76 = math.tanh %75 : vector<8x128xf32>
      %77 = arith.mulf %72, %76 : vector<8x128xf32>
      %78 = vector.broadcast %arg9 : i32 to vector<8x1xi32>
      %79 = arith.cmpi slt, %78, %9 : vector<8x1xi32>
      %80 = vector.shape_cast %79 : vector<8x1xi1> to vector<8x1xi1>
      %81 = vector.broadcast %80 : vector<8x1xi1> to vector<8x128xi1>
      %82 = arith.select %81, %77, %arg10 : vector<8x128xi1>, vector<8x128xf32>
      %83 = vector.shape_cast %79 : vector<8x1xi1> to vector<8x1xi1>
      %84 = vector.broadcast %83 : vector<8x1xi1> to vector<8x128xi1>
      %85 = arith.select %84, %75, %arg11 : vector<8x128xi1>, vector<8x128xf32>
      scf.yield %82, %85 : vector<8x128xf32>, vector<8x128xf32>
    }
    %c0_20 = arith.constant 0 : index
    %c0_21 = arith.constant 0 : index
    %46 = vector.load %arg7[%c0_20, %c0_21] : memref<8x128xf32, #tpu.memory_space<vmem>>, vector<8x128xf32>
    tpu.vector_store %arg7[%c0_20, %c0_21], %45#0 {strides = array<i32>} : memref<8x128xf32, #tpu.memory_space<vmem>>, vector<8x128xf32>,
    return
  }
  func.func @transform_0(%arg0: i32, %arg1: memref<1xi32, #tpu.memory_space<smem>>) -> (i32, i32, i32) {
    %c0_i32 = arith.constant 0 : i32
    %c0_i32_0 = arith.constant 0 : i32
    %c0_i32_1 = arith.constant 0 : i32
    return %arg0, %c0_i32, %c0_i32_0 : i32, i32, i32
  }
  func.func @transform_1(%arg0: i32, %arg1: memref<1xi32, #tpu.memory_space<smem>>) -> (i32, i32) {
    %c0_i32 = arith.constant 0 : i32
    %c0_i32_0 = arith.constant 0 : i32
    return %arg0, %c0_i32 : i32, i32
  }
  func.func @transform_2(%arg0: i32, %arg1: memref<1xi32, #tpu.memory_space<smem>>) -> (i32, i32) {
    %c0_i32 = arith.constant 0 : i32
    %c0_i32_0 = arith.constant 0 : i32
    %c0_i32_1 = arith.constant 0 : i32
    return %c0_i32, %c0_i32_0 : i32, i32
  }
  func.func @transform_3(%arg0: i32, %arg1: memref<1xi32, #tpu.memory_space<smem>>) -> (i32, i32) {
    %c0_i32 = arith.constant 0 : i32
    %c0_i32_0 = arith.constant 0 : i32
    %c0_i32_1 = arith.constant 0 : i32
    return %c0_i32, %c0_i32_0 : i32, i32
  }
  func.func @transform_4(%arg0: i32, %arg1: memref<1xi32, #tpu.memory_space<smem>>) -> (i32, i32) {
    %c0_i32 = arith.constant 0 : i32
    %c0_i32_0 = arith.constant 0 : i32
    %c0_i32_1 = arith.constant 0 : i32
    return %c0_i32, %c0_i32_0 : i32, i32
  }
  func.func @transform_5(%arg0: i32, %arg1: memref<1xi32, #tpu.memory_space<smem>>) -> (i32, i32) {
    %c0_i32 = arith.constant 0 : i32
    %c0_i32_0 = arith.constant 0 : i32
    return %arg0, %c0_i32 : i32, i32
  }
}

</mosaic_0001>

<bundles_post_ra>
// kernel: tpu_custom_call.1
= control target key start
LH: loop header
LB: loop body
LE: loop exit
PB: predicated region body
PF: predicated region fallthrough
CT: control target
= control target key end

     0   :  { %12 = vsyncpa [#allocation6], 0  ;;  %s1503_s0 = inlined_call_operand.<no memory space> [shape: s32[1], index: 0, kind: input, shape index: {}]   ;;  %s1504_s1 = inlined_call_operand.vmem [shape: f32[1,64,16], index: 1, kind: input, shape index: {}]   ;;  %s1505_s2 = inlined_call_operand.vmem [shape: s32[8,1], index: 2, kind: input, shape index: {}]   ;;  %s1506_s3 = inlined_call_operand.vmem [shape: f32[16,512], index: 3, kind: input, shape index: {}]   ;;  %s1507_s4 = inlined_call_operand.hbm [shape: f32[128,512], index: 4, kind: input, shape index: {}]   ;;  %s1508_s5 = inlined_call_operand.vmem [shape: f32[1,512], index: 5, kind: input, shape index: {}]   ;;  %s1509_s6 = inlined_call_operand.hbm [shape: f32[8,128], index: 6, kind: output, shape index: {}]  }
   0x1   :  { %13 = vsyncpa [#allocation7], 0  ;;  %s1004_s21 = smov [#allocation5]  }
   0x2   :  { %s25_s22 = sshll.u32 %s1004_s21, 4  ;;  %s26_s22 = int_to_ptr.vmem [resolvable:$true] %s25_s22 }
   0x3   :  { %s936_s23 = scalar_lea.vmem %s26_s22, 8192  ;;  %p941_p1 = scmp.lt.s32.totalorder %s26_s22, %s26_s22 }
   0x4   :  { %p937_p0 = scmp.ne.s32.totalorder %s26_s22, %s936_s23  ;;  %p942_p2 = scmp.lt.s32.totalorder %s936_s23, %s936_s23 }
   0x6   :  { %p943_p3 = por %p942_p2, %p941_p1 }
   0x8   :  { %p944_p4 = pnand %p943_p3, %p937_p0 }
   0xa   :  { %947 = shalt.err (!%p944_p4)
}
   0xb   :  { %s1005_s24 = smov 512   ;;  %s1006_s25 = smov 32  }
   0xc   :  { %31 = dma.hbm_to_vmem [thread:$0]  %s1507_s4, 8192, %s26_s22, [#allocation6], %s1005_s24, %s1005_s24, %s1006_s25  }
   0xd   :  { %984 = dma.done.wait [#allocation6], 8192  }
   0xe   :  { %985 = vsyncadd [#allocation6], 4294959104  ;;  %v1510_v0 = vmov 0.0   ;;  %v1054_v1 = vld [vmem:[%s1505_s2] sm:$0xff]  ;;  %v50_v2 = vld [vmem:[%s1506_s3 + $0x28] sm:$0xff]  ;;  %vm75_vm0 = vcmask 130048  }
   0xf   :  { %164 = vmatprep.mubr.f32.mxu0 %v1510_v0  ;;  %277 = vmatprep.mubr.f32.mxu1 %v1510_v0  ;;  %1533 = vst [vmem:[#allocation11_spill] sm:$0xff] %v1054_v1  ;;  %v52_v3 = vld [vmem:[%s1506_s3 + $0x38] sm:$0xff]  ;;  %v49_v4 = vld [vmem:[%s1506_s3 + $0x20] sm:$0xff]  ;;  %v51_v5 = vld [vmem:[%s1506_s3 + $0x30] sm:$0xff]  ;;  %p598_p5 = scmp.lt.s32.totalorder %s1503_s0, 8  ;;  %p852_p6 = scmp.le.s32.totalorder %s1503_s0, 0 }
  0x10   :  { %128 = vmatprep.subr.mxu0 %v50_v2  ;;  %241 = vmatprep.subr.mxu1 %v52_v3  ;;  %v46_v6 = vld [vmem:[%s1506_s3 + $0x8] sm:$0xff]  ;;  %v48_v7 = vld [vmem:[%s1506_s3 + $0x18] sm:$0xff]  ;;  %v45_v8 = vld [vmem:[%s1506_s3] sm:$0xff]  ;;  %s1406_s16 = smov (!%p852_p6), 0  }
  0x11   :  { %129 = vmatpush1.msra.mxu0 %v49_v4  ;;  %242 = vmatpush1.msra.mxu1 %v51_v5  ;;  %v47_v9 = vld [vmem:[%s1506_s3 + $0x10] sm:$0xff]  ;;  %v37_v10 = vld [vmem:[%s1504_s1] sm:$0xff]  ;;  %v1083_v11 = vld [vmem:[#allocation5 + $0x1e8] sm:$0xff]  ;;  %s1336_s2 = scalar_select %p598_p5, %s1503_s0, 8 }
  0x12   :  { %130 = vmatprep.subr.mxu0 %v46_v6  ;;  %243 = vmatprep.subr.mxu1 %v48_v7  ;;  %v1085_v12 = vld [vmem:[#allocation5 + $0x1f8] sm:$0xff]  ;;  %v1087_v13 = vld [vmem:[#allocation5 + $0x1e0] sm:$0xff]  ;;  %v1089_v14 = vld [vmem:[#allocation5 + $0x1f0] sm:$0xff] }
  0x13   :  { %131 = vmatpush1.msra.mxu0 %v45_v8  ;;  %244 = vmatpush1.msra.mxu1 %v47_v9  ;;  %v1093_v15 = vld [vmem:[#allocation5 + $0x1c8] sm:$0xff]  ;;  %v1095_v16 = vld [vmem:[#allocation5 + $0x1d8] sm:$0xff]  ;;  %v1101_v17 = vld [vmem:[#allocation5 + $0x1c0] sm:$0xff] }
  0x14   :  { %826 = vmatmul.mubr.msk.f32.vlgmr.msra.gmra.mxu0 %vm75_vm0, %v37_v10  ;;  %834 = vmatmul.mubr.msk.f32.vlgmr.msra.gmra.mxu1 %vm75_vm0, %v37_v10  ;;  %v1103_v18 = vld [vmem:[#allocation5 + $0x1d0] sm:$0xff]  ;;  %v38_v19 = vld [vmem:[%s1504_s1 + $0x8] sm:$0xff]  ;;  %v1114_v21 = vld [vmem:[#allocation5 + $0x1b8] sm:$0xff] }
  0x15   :  { %427 = vmatprep.subr.mxu0 %v1083_v11  ;;  %498 = vmatprep.subr.mxu1 %v1085_v12  ;;  %v1112_v20 = vld [vmem:[#allocation5 + $0x1a8] sm:$0xff]  ;;  %v1118_v22 = vld [vmem:[#allocation5 + $0x1a0] sm:$0xff]  ;;  %v1120_v23 = vld [vmem:[#allocation5 + $0x1b0] sm:$0xff] }
  0x16   :  { %428 = vmatpush1.msra.mxu0 %v1087_v13  ;;  %499 = vmatpush1.msra.mxu1 %v1089_v14  ;;  %v1124_v24 = vld [vmem:[#allocation5 + $0x188] sm:$0xff]  ;;  %v1126_v25 = vld [vmem:[#allocation5 + $0x198] sm:$0xff]  ;;  %v1132_v26 = vld [vmem:[#allocation5 + $0x180] sm:$0xff] }
  0x17   :  { %429 = vmatprep.subr.mxu0 %v1093_v15  ;;  %500 = vmatprep.subr.mxu1 %v1095_v16  ;;  %v1134_v27 = vld [vmem:[#allocation5 + $0x190] sm:$0xff]  ;;  %v1143_v29 = vld [vmem:[#allocation5 + $0x168] sm:$0xff]  ;;  %v1145_v30 = vld [vmem:[#allocation5 + $0x178] sm:$0xff] }
  0x18   :  { %170 = vmatprep.mubr.f32.mxu0 %v1510_v0  ;;  %283 = vmatprep.mubr.f32.mxu1 %v1510_v0  ;;  %v39_v28 = vld [vmem:[%s1504_s1 + $0x10] sm:$0xff]  ;;  %v1149_v31 = vld [vmem:[#allocation5 + $0x160] sm:$0xff]  ;;  %v1155_v33 = vld [vmem:[#allocation5 + $0x148] sm:$0xff] }
  0x19   :  { %430 = vmatpush1.msra.mxu0 %v1101_v17  ;;  %501 = vmatpush1.msra.mxu1 %v1103_v18  ;;  %v1151_v32 = vld [vmem:[#allocation5 + $0x170] sm:$0xff]  ;;  %v1157_v34 = vld [vmem:[#allocation5 + $0x158] sm:$0xff]  ;;  %v1163_v35 = vld [vmem:[#allocation5 + $0x140] sm:$0xff] }
  0x1a   :  { %827 = vmatmul.mubr.msk.f32.gmra.mxu0 %vm75_vm0, %v38_v19  ;;  %835 = vmatmul.mubr.msk.f32.gmra.mxu1 %vm75_vm0, %v38_v19  ;;  %v1165_v36 = vld [vmem:[#allocation5 + $0x150] sm:$0xff]  ;;  %v40_v37 = vld [vmem:[%s1504_s1 + $0x18] sm:$0xff]  ;;  %v1174_v38 = vld [vmem:[#allocation5 + $0x128] sm:$0xff] }
  0x1b   :  { %431 = vmatprep.subr.mxu0 %v1112_v20  ;;  %502 = vmatprep.subr.mxu1 %v1114_v21  ;;  %v1176_v39 = vld [vmem:[#allocation5 + $0x138] sm:$0xff]  ;;  %v1180_v40 = vld [vmem:[#allocation5 + $0x120] sm:$0xff]  ;;  %v1182_v41 = vld [vmem:[#allocation5 + $0x130] sm:$0xff] }
  0x1c   :  { %432 = vmatpush1.msra.mxu0 %v1118_v22  ;;  %503 = vmatpush1.msra.mxu1 %v1120_v23  ;;  %v1186_v42 = vld [vmem:[#allocation5 + $0x108] sm:$0xff]  ;;  %v1188_v43 = vld [vmem:[#allocation5 + $0x118] sm:$0xff]  ;;  %v1194_v44 = vld [vmem:[#allocation5 + $0x100] sm:$0xff] }
  0x1d   :  { %433 = vmatprep.subr.mxu0 %v1124_v24  ;;  %504 = vmatprep.subr.mxu1 %v1126_v25  ;;  %v1196_v45 = vld [vmem:[#allocation5 + $0x110] sm:$0xff]  ;;  %v41_v46 = vld [vmem:[%s1504_s1 + $0x20] sm:$0xff]  ;;  %v1205_v47 = vld [vmem:[#allocation5 + $0xe8] sm:$0xff] }
  0x1e   :  { %176 = vmatprep.mubr.f32.mxu0 %v1510_v0  ;;  %289 = vmatprep.mubr.f32.mxu1 %v1510_v0  ;;  %v1207_v48 = vld [vmem:[#allocation5 + $0xf8] sm:$0xff]  ;;  %v1211_v49 = vld [vmem:[#allocation5 + $0xe0] sm:$0xff]  ;;  %v1213_v50 = vld [vmem:[#allocation5 + $0xf0] sm:$0xff] }
  0x1f   :  { %434 = vmatpush1.msra.mxu0 %v1132_v26  ;;  %505 = vmatpush1.msra.mxu1 %v1134_v27  ;;  %v1217_v51 = vld [vmem:[#allocation5 + $0xc8] sm:$0xff]  ;;  %v1219_v52 = vld [vmem:[#allocation5 + $0xd8] sm:$0xff]  ;;  %v1225_v53 = vld [vmem:[#allocation5 + $0xc0] sm:$0xff] }
  0x20   :  { %828 = vmatmul.mubr.msk.f32.gmra.mxu0 %vm75_vm0, %v39_v28  ;;  %836 = vmatmul.mubr.msk.f32.gmra.mxu1 %vm75_vm0, %v39_v28  ;;  %v1227_v54 = vld [vmem:[#allocation5 + $0xd0] sm:$0xff]  ;;  %v42_v55 = vld [vmem:[%s1504_s1 + $0x28] sm:$0xff]  ;;  %v1238_v57 = vld [vmem:[#allocation5 + $0xb8] sm:$0xff] }
  0x21   :  { %435 = vmatprep.subr.mxu0 %v1143_v29  ;;  %506 = vmatprep.subr.mxu1 %v1145_v30  ;;  %v1236_v56 = vld [vmem:[#allocation5 + $0xa8] sm:$0xff]  ;;  %v1242_v58 = vld [vmem:[#allocation5 + $0xa0] sm:$0xff]  ;;  %v1244_v59 = vld [vmem:[#allocation5 + $0xb0] sm:$0xff] }
  0x22   :  { %436 = vmatpush1.msra.mxu0 %v1149_v31  ;;  %507 = vmatpush1.msra.mxu1 %v1151_v32  ;;  %1534 = vst [vmem:[#allocation12_spill] sm:$0xff] %v1244_v59  ;;  %v1248_v60 = vld [vmem:[#allocation5 + $0x88] sm:$0xff]  ;;  %v1250_v61 = vld [vmem:[#allocation5 + $0x98] sm:$0xff]  ;;  %v1256_v62 = vld [vmem:[#allocation5 + $0x80] sm:$0xff] }
  0x23   :  { %437 = vmatprep.subr.mxu0 %v1155_v33  ;;  %508 = vmatprep.subr.mxu1 %v1157_v34  ;;  %1535 = vst [vmem:[#allocation13_spill] sm:$0xff] %v1248_v60  ;;  %1536 = vst [vmem:[#allocation14_spill] sm:$0xff] %v1250_v61  ;;  %v1258_v63 = vld [vmem:[#allocation5 + $0x90] sm:$0xff]  ;;  %v1267_v3 = vld [vmem:[#allocation5 + $0x68] sm:$0xff] }
  0x24   :  { %182 = vmatprep.mubr.f32.mxu0 %v1510_v0  ;;  %295 = vmatprep.mubr.f32.mxu1 %v1510_v0  ;;  %1537 = vst [vmem:[#allocation15_spill] sm:$0xff] %v1256_v62  ;;  %1538 = vst [vmem:[#allocation16_spill] sm:$0xff] %v1258_v63  ;;  %v43_v2 = vld [vmem:[%s1504_s1 + $0x30] sm:$0xff]  ;;  %v1269_v4 = vld [vmem:[#allocation5 + $0x78] sm:$0xff] }
  0x25   :  { %438 = vmatpush1.msra.mxu0 %v1163_v35  ;;  %509 = vmatpush1.msra.mxu1 %v1165_v36  ;;  %1539 = vst [vmem:[#allocation17_spill] sm:$0xff] %v1267_v3  ;;  %1540 = vst [vmem:[#allocation18_spill] sm:$0xff] %v1269_v4  ;;  %v1273_v5 = vld [vmem:[#allocation5 + $0x60] sm:$0xff]  ;;  %v1275_v6 = vld [vmem:[#allocation5 + $0x70] sm:$0xff] }
  0x26   :  { %829 = vmatmul.mubr.msk.f32.gmra.mxu0 %vm75_vm0, %v40_v37  ;;  %837 = vmatmul.mubr.msk.f32.gmra.mxu1 %vm75_vm0, %v40_v37  ;;  %1541 = vst [vmem:[#allocation19_spill] sm:$0xff] %v1273_v5  ;;  %1542 = vst [vmem:[#allocation20_spill] sm:$0xff] %v1275_v6  ;;  %v1279_v7 = vld [vmem:[#allocation5 + $0x48] sm:$0xff]  ;;  %v1281_v8 = vld [vmem:[#allocation5 + $0x58] sm:$0xff] }
  0x27   :  { %439 = vmatprep.subr.mxu0 %v1174_v38  ;;  %510 = vmatprep.subr.mxu1 %v1176_v39  ;;  %1543 = vst [vmem:[#allocation21_spill] sm:$0xff] %v1279_v7  ;;  %1544 = vst [vmem:[#allocation22_spill] sm:$0xff] %v1281_v8  ;;  %v1287_v9 = vld [vmem:[#allocation5 + $0x40] sm:$0xff]  ;;  %v1289_v10 = vld [vmem:[#allocation5 + $0x50] sm:$0xff] }
  0x28   :  { %440 = vmatpush1.msra.mxu0 %v1180_v40  ;;  %511 = vmatpush1.msra.mxu1 %v1182_v41  ;;  %1545 = vst [vmem:[#allocation23_spill] sm:$0xff] %v1287_v9  ;;  %1546 = vst [vmem:[#allocation24_spill] sm:$0xff] %v1289_v10  ;;  %v44_v19 = vld [vmem:[%s1504_s1 + $0x38] sm:$0xff]  ;;  %v1298_v28 = vld [vmem:[#allocation5 + $0x28] sm:$0xff] }
  0x29   :  { %441 = vmatprep.subr.mxu0 %v1186_v42  ;;  %512 = vmatprep.subr.mxu1 %v1188_v43  ;;  %1547 = vst [vmem:[#allocation25_spill] sm:$0xff] %v1298_v28  ;;  %v1300_v37 = vld [vmem:[#allocation5 + $0x38] sm:$0xff] }
  0x2a   :  { %188 = vmatprep.mubr.f32.mxu0 %v1510_v0  ;;  %301 = vmatprep.mubr.f32.mxu1 %v1510_v0  ;;  %1548 = vst [vmem:[#allocation26_spill] sm:$0xff] %v1300_v37  ;;  %v1312_v1 = vld [vmem:[#allocation5 + $0x18] sm:$0xff] }
  0x2b   :  { %442 = vmatpush1.msra.mxu0 %v1194_v44  ;;  %513 = vmatpush1.msra.mxu1 %v1196_v45  ;;  %1552 = vst [vmem:[#allocation30_spill] sm:$0xff] %v1312_v1 }
  0x2c   :  { %830 = vmatmul.mubr.msk.f32.gmra.mxu0 %vm75_vm0, %v41_v46  ;;  %838 = vmatmul.mubr.msk.f32.gmra.mxu1 %vm75_vm0, %v41_v46  ;;  %v1304_v46 = vld [vmem:[#allocation5 + $0x20] sm:$0xff] }
  0x2d   :  { %443 = vmatprep.subr.mxu0 %v1205_v47  ;;  %514 = vmatprep.subr.mxu1 %v1207_v48  ;;  %1549 = vst [vmem:[#allocation27_spill] sm:$0xff] %v1304_v46 }
  0x2e   :  { %444 = vmatpush1.msra.mxu0 %v1211_v49  ;;  %515 = vmatpush1.msra.mxu1 %v1213_v50 }
  0x2f   :  { %445 = vmatprep.subr.mxu0 %v1217_v51  ;;  %516 = vmatprep.subr.mxu1 %v1219_v52 }
  0x30   :  { %194 = vmatprep.mubr.f32.mxu0 %v1510_v0  ;;  %307 = vmatprep.mubr.f32.mxu1 %v1510_v0 }
  0x31   :  { %446 = vmatpush1.msra.mxu0 %v1225_v53  ;;  %517 = vmatpush1.msra.mxu1 %v1227_v54 }
  0x32   :  { %831 = vmatmul.mubr.msk.f32.gmra.mxu0 %vm75_vm0, %v42_v55  ;;  %839 = vmatmul.mubr.msk.f32.gmra.mxu1 %vm75_vm0, %v42_v55  ;;  %v1306_v55 = vld [vmem:[#allocation5 + $0x30] sm:$0xff] }
  0x33   :  { %447 = vmatprep.subr.mxu0 %v1236_v56  ;;  %518 = vmatprep.subr.mxu1 %v1238_v57  ;;  %1550 = vst [vmem:[#allocation28_spill] sm:$0xff] %v1306_v55 }
  0x34   :  { %448 = vmatpush1.msra.mxu0 %v1242_v58  ;;  %519 = vmatpush1.msra.mxu1 %v1244_v59 }
  0x35   :  { %449 = vmatprep.subr.mxu0 %v1248_v60  ;;  %520 = vmatprep.subr.mxu1 %v1250_v61 }
  0x36   :  { %200 = vmatprep.mubr.f32.mxu0 %v1510_v0  ;;  %313 = vmatprep.mubr.f32.mxu1 %v1510_v0 }
  0x37   :  { %450 = vmatpush1.msra.mxu0 %v1256_v62  ;;  %521 = vmatpush1.msra.mxu1 %v1258_v63 }
  0x38   :  { %832 = vmatmul.mubr.msk.f32.gmra.mxu0 %vm75_vm0, %v43_v2  ;;  %840 = vmatmul.mubr.msk.f32.gmra.mxu1 %vm75_vm0, %v43_v2  ;;  %v1310_v2 = vld [vmem:[#allocation5 + $0x8] sm:$0xff] }
  0x39   :  { %451 = vmatprep.subr.mxu0 %v1267_v3  ;;  %522 = vmatprep.subr.mxu1 %v1269_v4  ;;  %1551 = vst [vmem:[#allocation29_spill] sm:$0xff] %v1310_v2 }
  0x3a   :  { %452 = vmatpush1.msra.mxu0 %v1273_v5  ;;  %523 = vmatpush1.msra.mxu1 %v1275_v6 }
  0x3b   :  { %453 = vmatprep.subr.mxu0 %v1279_v7  ;;  %524 = vmatprep.subr.mxu1 %v1281_v8 }
  0x3c   :  { %206 = vmatprep.mubr.f32.mxu0 %v1510_v0  ;;  %319 = vmatprep.mubr.f32.mxu1 %v1510_v0  ;;  %v1316_v0 = vld [vmem:[#allocation5] sm:$0xff] }
  0x3d   :  { %454 = vmatpush1.msra.mxu0 %v1287_v9  ;;  %525 = vmatpush1.msra.mxu1 %v1289_v10  ;;  %1553 = vst [vmem:[#allocation31_spill] sm:$0xff] %v1316_v0  ;;  %v1320_v10 = vld [vmem:[#allocation5 + $0x10] sm:$0xff] }
  0x3e   :  { %833 = vmatmul.mubr.msk.f32.gmra.mxu0 %vm75_vm0, %v44_v19  ;;  %841 = vmatmul.mubr.msk.f32.gmra.mxu1 %vm75_vm0, %v44_v19  ;;  %1554 = vst [vmem:[#allocation32_spill] sm:$0xff] %v1320_v10  ;;  %v1555_v19 = vmov 0.0  }
  0x3f   :  { %455 = vmatprep.subr.mxu0 %v1298_v28  ;;  %526 = vmatprep.subr.mxu1 %v1300_v37 }
  0x40   :  { %456 = vmatpush1.msra.mxu0 %v1304_v46  ;;  %527 = vmatpush1.msra.mxu1 %v1306_v55 }
  0x41   :  { %457 = vmatprep.subr.mxu0 %v1310_v2  ;;  %528 = vmatprep.subr.mxu1 %v1312_v1  ;;  %v55_v1 = vlaneseq }
  0x42   :  { %458 = vmatpush1.msra.mxu0 %v1316_v0  ;;  %491 = vmatprep.mubr.f32.mxu0 %v1555_v19 }
  0x43   :  { %529 = vmatpush1.msra.mxu1 %v1320_v10  ;;  %562 = vmatprep.mubr.f32.mxu1 %v1555_v19  ;;  %v56_v0 = vshrl.u32 %v55_v1, 7  ;;  %v53_v10 = vld [vmem:[%s1508_s5] sm:$0xf] }
  0x44   :  { %492 = vmatmul.mubr.f32.vlgmr.msra.gmra.mxu0 %v1555_v19  ;;  %563 = vmatmul.mubr.f32.vlgmr.msra.gmra.mxu1 %v1555_v19 }
  0x45   :  { %v57_v55 = vsub.s32 0, %v56_v0  ;;  %v65_v2 = vsub.s32 2, %v56_v0  ;;  %v61_v37 = vsub.s32 1, %v56_v0  ;;  %v69_v46 = vsub.s32 3, %v56_v0 }
  0x47   :  { %v1341_v19 = vrot.slane %v53_v10, %v57_v55  ;;  %v1343_v28 = vrot.slane %v53_v10, %v65_v2  ;;  %v1345_v8 = vrot.slane %v53_v10, %v61_v37  ;;  %v1347_v9 = vrot.slane %v53_v10, %v69_v46 }
  0xd4   :  { %v166_v6 = vpop.f32.mrf.mxu0  ;;  %v279_v7 = vpop.f32.mrf.mxu1 }
  0xd5   :  { %v1350_v1 = vadd.f32 %v166_v6, %v1341_v19  ;;  %v1353_v4 = vadd.f32 %v279_v7, %v1343_v28 }
  0xd6   :  { %v168_v5 = vpop.f32.mrf.mxu0  ;;  %v281_v63 = vpop.f32.mrf.mxu1 }
  0xd7   :  { %326 = vst [vmem:[#allocation2] sm:$0xff] %v1350_v1  ;;  %328 = vst [vmem:[#allocation2 + $0x10] sm:$0xff] %v1353_v4  ;;  %v1358_v0 = vadd.f32 %v168_v5, %v1345_v8  ;;  %v1361_v10 = vadd.f32 %v281_v63, %v1347_v9 }
  0xd9   :  { %327 = vst [vmem:[#allocation2 + $0x8] sm:$0xff] %v1358_v0  ;;  %329 = vst [vmem:[#allocation2 + $0x18] sm:$0xff] %v1361_v10 }
  0xda   :  { %v172_v6 = vpop.f32.mrf.mxu0  ;;  %v285_v37 = vpop.f32.mrf.mxu1 }
  0xdb   :  { %v173_v7 = vadd.f32 %v172_v6, %v1341_v19  ;;  %v286_v46 = vadd.f32 %v285_v37, %v1343_v28 }
  0xdc   :  { %v174_v55 = vpop.f32.mrf.mxu0  ;;  %v287_v2 = vpop.f32.mrf.mxu1 }
  0xdd   :  { %330 = vst [vmem:[#allocation2 + $0x20] sm:$0xff] %v173_v7  ;;  %332 = vst [vmem:[#allocation2 + $0x30] sm:$0xff] %v286_v46  ;;  %v175_v5 = vadd.f32 %v174_v55, %v1345_v8  ;;  %v288_v3 = vadd.f32 %v287_v2, %v1347_v9 }
  0xdf   :  { %331 = vst [vmem:[#allocation2 + $0x28] sm:$0xff] %v175_v5  ;;  %333 = vst [vmem:[#allocation2 + $0x38] sm:$0xff] %v288_v3 }
  0xe0   :  { %v178_v63 = vpop.f32.mrf.mxu0  ;;  %v291_v61 = vpop.f32.mrf.mxu1 }
  0xe1   :  { %v179_v62 = vadd.f32 %v178_v63, %v1341_v19  ;;  %v292_v59 = vadd.f32 %v291_v61, %v1343_v28 }
  0xe2   :  { %v180_v60 = vpop.f32.mrf.mxu0  ;;  %v293_v6 = vpop.f32.mrf.mxu1 }
  0xe3   :  { %334 = vst [vmem:[#allocation2 + $0x40] sm:$0xff] %v179_v62  ;;  %336 = vst [vmem:[#allocation2 + $0x50] sm:$0xff] %v292_v59  ;;  %v181_v37 = vadd.f32 %v180_v60, %v1345_v8  ;;  %v294_v7 = vadd.f32 %v293_v6, %v1347_v9 }
  0xe5   :  { %335 = vst [vmem:[#allocation2 + $0x48] sm:$0xff] %v181_v37  ;;  %337 = vst [vmem:[#allocation2 + $0x58] sm:$0xff] %v294_v7 }
  0xe6   :  { %v184_v46 = vpop.f32.mrf.mxu0  ;;  %v297_v55 = vpop.f32.mrf.mxu1 }
  0xe7   :  { %v185_v3 = vadd.f32 %v184_v46, %v1341_v19  ;;  %v298_v2 = vadd.f32 %v297_v55, %v1343_v28 }
  0xe8   :  { %v186_v5 = vpop.f32.mrf.mxu0  ;;  %v299_v63 = vpop.f32.mrf.mxu1 }
  0xe9   :  { %338 = vst [vmem:[#allocation2 + $0x60] sm:$0xff] %v185_v3  ;;  %340 = vst [vmem:[#allocation2 + $0x70] sm:$0xff] %v298_v2  ;;  %v187_v61 = vadd.f32 %v186_v5, %v1345_v8  ;;  %v300_v59 = vadd.f32 %v299_v63, %v1347_v9 }
  0xeb   :  { %339 = vst [vmem:[#allocation2 + $0x68] sm:$0xff] %v187_v61  ;;  %341 = vst [vmem:[#allocation2 + $0x78] sm:$0xff] %v300_v59 }
  0xec   :  { %v190_v60 = vpop.f32.mrf.mxu0  ;;  %v303_v62 = vpop.f32.mrf.mxu1 }
  0xed   :  { %v191_v6 = vadd.f32 %v190_v60, %v1341_v19  ;;  %v304_v37 = vadd.f32 %v303_v62, %v1343_v28 }
  0xee   :  { %v192_v7 = vpop.f32.mrf.mxu0  ;;  %v305_v46 = vpop.f32.mrf.mxu1 }
  0xef   :  { %342 = vst [vmem:[#allocation2 + $0x80] sm:$0xff] %v191_v6  ;;  %344 = vst [vmem:[#allocation2 + $0x90] sm:$0xff] %v304_v37  ;;  %v193_v55 = vadd.f32 %v192_v7, %v1345_v8  ;;  %v306_v3 = vadd.f32 %v305_v46, %v1347_v9 }
  0xf1   :  { %343 = vst [vmem:[#allocation2 + $0x88] sm:$0xff] %v193_v55  ;;  %345 = vst [vmem:[#allocation2 + $0x98] sm:$0xff] %v306_v3 }
  0xf2   :  { %v196_v2 = vpop.f32.mrf.mxu0  ;;  %v309_v5 = vpop.f32.mrf.mxu1 }
  0xf3   :  { %v197_v63 = vadd.f32 %v196_v2, %v1341_v19  ;;  %v310_v61 = vadd.f32 %v309_v5, %v1343_v28 }
  0xf4   :  { %v198_v59 = vpop.f32.mrf.mxu0  ;;  %v311_v60 = vpop.f32.mrf.mxu1 }
  0xf5   :  { %346 = vst [vmem:[#allocation2 + $0xa0] sm:$0xff] %v197_v63  ;;  %348 = vst [vmem:[#allocation2 + $0xb0] sm:$0xff] %v310_v61  ;;  %v199_v62 = vadd.f32 %v198_v59, %v1345_v8  ;;  %v312_v6 = vadd.f32 %v311_v60, %v1347_v9 }
  0xf7   :  { %347 = vst [vmem:[#allocation2 + $0xa8] sm:$0xff] %v199_v62  ;;  %349 = vst [vmem:[#allocation2 + $0xb8] sm:$0xff] %v312_v6 }
  0xf8   :  { %v202_v37 = vpop.f32.mrf.mxu0  ;;  %v315_v7 = vpop.f32.mrf.mxu1 }
  0xf9   :  { %v203_v46 = vadd.f32 %v202_v37, %v1341_v19  ;;  %v316_v55 = vadd.f32 %v315_v7, %v1343_v28 }
  0xfa   :  { %v204_v3 = vpop.f32.mrf.mxu0  ;;  %v317_v2 = vpop.f32.mrf.mxu1 }
  0xfb   :  { %350 = vst [vmem:[#allocation2 + $0xc0] sm:$0xff] %v203_v46  ;;  %352 = vst [vmem:[#allocation2 + $0xd0] sm:$0xff] %v316_v55  ;;  %v205_v5 = vadd.f32 %v204_v3, %v1345_v8  ;;  %v318_v63 = vadd.f32 %v317_v2, %v1347_v9 }
  0xfd   :  { %351 = vst [vmem:[#allocation2 + $0xc8] sm:$0xff] %v205_v5  ;;  %353 = vst [vmem:[#allocation2 + $0xd8] sm:$0xff] %v318_v63 }
  0xfe   :  { %v208_v61 = vpop.f32.mrf.mxu0  ;;  %v321_v59 = vpop.f32.mrf.mxu1 }
  0xff   :  { %v209_v60 = vadd.f32 %v208_v61, %v1341_v19  ;;  %v322_v62 = vadd.f32 %v321_v59, %v1343_v28 }
 0x100   :  { %v210_v6 = vpop.f32.mrf.mxu0  ;;  %v323_v37 = vpop.f32.mrf.mxu1 }
 0x101   :  { %354 = vst [vmem:[#allocation2 + $0xe0] sm:$0xff] %v209_v60  ;;  %356 = vst [vmem:[#allocation2 + $0xf0] sm:$0xff] %v322_v62  ;;  %v211_v7 = vadd.f32 %v210_v6, %v1345_v8  ;;  %v324_v46 = vadd.f32 %v323_v37, %v1347_v9 }
 0x103   :  { %355 = vst [vmem:[#allocation2 + $0xe8] sm:$0xff] %v211_v7  ;;  %357 = vst [vmem:[#allocation2 + $0xf8] sm:$0xff] %v324_v46 }
 0x104   :  { %v493_v55 = vpop.f32.mrf.mxu0  ;;  %v564_v19 = vpop.f32.mrf.mxu1 }
 0x105   :  { %v569_v3 = vadd.f32 %v493_v55, %v1350_v1  ;;  %v571_v9 = vadd.f32 %v564_v19, %v1353_v4 }
 0x106   :  { %v495_v2 = vpop.f32.mrf.mxu0  ;;  %v566_v61 = vpop.f32.mrf.mxu1 }
 0x107   :  { %v842_v5 = vmul.f32 -1.442695, %v569_v3  ;;  %v570_v63 = vadd.f32 %v495_v2, %v1358_v0  ;;  %v572_v59 = vadd.f32 %v566_v61, %v1361_v10 }
 0x109   :  { %895 = vpow2.f32 %v842_v5  ;;  %v843_v28 = vmul.f32 -1.442695, %v570_v63  ;;  %v844_v60 = vmul.f32 -1.442695, %v572_v59 }
 0x10b   :  { %897 = vpow2.f32 %v843_v28 }
 0x10c   :  { %899 = vpow2.f32 %v844_v60 }
 0x116   :  { %v896_v8 = vpop.eup %895 }
 0x117   :  { %v576_v62 = vadd.f32 1.0, %v896_v8 }
 0x118   :  { %v898_v6 = vpop.eup %897 }
 0x119   :  { %901 = vrcp.f32 %v576_v62  ;;  %v582_v1 = vadd.f32 1.0, %v898_v6  ;;  %v900_v37 = vpop.eup %899 }
 0x11a   :  { %903 = vtanh.f32 %v571_v9  ;;  %v589_v55 = vadd.f32 1.0, %v900_v37 }
 0x11b   :  { %905 = vrcp.f32 %v582_v1 }
 0x11c   :  { %907 = vrcp.f32 %v589_v55 }
 0x126   :  { %v902_v0 = vpop.eup %901 }
 0x127   :  { %v904_v7 = vpop.eup %903 }
 0x128   :  { %v906_v46 = vpop.eup %905  ;;  %v593_v2 = vmul.f32 %v904_v7, %v902_v0 }
 0x129   :  { %v592_v3 = vmul.f32 0.0, %v906_v46  ;;  %v908_v10 = vpop.eup %907 }
 0x12b   :  { %v594_v5 = vadd.f32 %v593_v2, %v592_v3  }
 0x12d   :  { %909 = vtanh.f32 %v594_v5 }
 0x139   :  { %819 = sbr.rel (%p852_p6) target bundleno = 601 (0x259), region = 46 }
 0x13a   :  { %v910_v63 = vpop.eup %909 }
 0x13b   :  { %v596_v4 = vmul.f32 %v910_v63, %v908_v10  }
 0x13d   :  { %v1556_v19 = vmov %v596_v4 }
 0x13e LB: > { %618 = vmatprep.subr.mxu0 %v1083_v11  ;;  %689 = vmatprep.subr.mxu1 %v1085_v12  ;;  %v1008_v28 = vmov 0.0   ;;  %v1557_v61 = vld [vmem:[#allocation13_spill] sm:$0xff]  ;;  %v1558_v59 = vld [vmem:[#allocation12_spill] sm:$0xff]  ;;  %v1559_v60 = vld [vmem:[#allocation15_spill] sm:$0xff]  ;;  %v788_v37 = vstv %s998_s16  ;;  %s846_s0 = sshll.u32 %s998_s16, 3  ;;  %s603_s16 = sadd.s32 1, %s998_s16   ;;  %s998_s16 = sphi %s1406_s16, %s603_s16   ;;  %v994_v4 = vphi %v596_v4, %v1579_v4   ;;  %v990_v5 = vphi %v594_v5, %v796_v5  }
 0x13f   : > { %619 = vmatpush1.msra.mxu0 %v1087_v13  ;;  %690 = vmatpush1.msra.mxu1 %v1089_v14  ;;  %v1560_v8 = vld [vmem:[#allocation14_spill] sm:$0xff]  ;;  %v1561_v9 = vld [vmem:[#allocation17_spill] sm:$0xff]  ;;  %v1562_v62 = vld [vmem:[#allocation16_spill] sm:$0xff]  ;;  %s609_s17 = sshra.s32 %s846_s0, 3  ;;  %p602_p7 = scmp.ge.s32.totalorder %s603_s16, %s1336_s2 }
 0x140   : > { %620 = vmatprep.subr.mxu0 %v1093_v15  ;;  %691 = vmatprep.subr.mxu1 %v1095_v16  ;;  %v1563_v6 = vld [vmem:[#allocation19_spill] sm:$0xff]  ;;  %v1564_v1 = vld [vmem:[#allocation18_spill] sm:$0xff]  ;;  %v1565_v0 = vld [vmem:[#allocation21_spill] sm:$0xff]  ;;  %s855_s18 = sshll.u32 %s609_s17, 5 }
 0x141   : > { %621 = vmatpush1.msra.mxu0 %v1101_v17  ;;  %692 = vmatpush1.msra.mxu1 %v1103_v18  ;;  %v1566_v7 = vld [vmem:[#allocation20_spill] sm:$0xff]  ;;  %v1567_v46 = vld [vmem:[#allocation23_spill] sm:$0xff]  ;;  %v1568_v55 = vld [vmem:[#allocation22_spill] sm:$0xff]  ;;  %s613_s19 = scalar_lea.vmem [#allocation2], %s855_s18 }
 0x142   : > { %622 = vmatprep.subr.mxu0 %v1112_v20  ;;  %693 = vmatprep.subr.mxu1 %v1114_v21  ;;  %v1569_v3 = vld [vmem:[#allocation25_spill] sm:$0xff]  ;;  %v1570_v2 = vld [vmem:[#allocation24_spill] sm:$0xff]  ;;  %v1571_v10 = vld [vmem:[#allocation11_spill] sm:$0xff] }
 0x143   : > { %623 = vmatpush1.msra.mxu0 %v1118_v22  ;;  %694 = vmatpush1.msra.mxu1 %v1120_v23  ;;  %vm789_vm1 = vcmp.lt.s32.totalorder %v788_v37, %v1571_v10  ;;  %v1572_v63 = vld [vmem:[#allocation27_spill] sm:$0xff]  ;;  %v1573_v19 = vld [vmem:[#allocation26_spill] sm:$0xff] }
 0x144   : > { %624 = vmatprep.subr.mxu0 %v1124_v24  ;;  %695 = vmatprep.subr.mxu1 %v1126_v25 }
 0x145   : > { %625 = vmatpush1.msra.mxu0 %v1132_v26  ;;  %696 = vmatpush1.msra.mxu1 %v1134_v27 }
 0x146   : > { %626 = vmatprep.subr.mxu0 %v1143_v29  ;;  %697 = vmatprep.subr.mxu1 %v1145_v30 }
 0x147   : > { %627 = vmatpush1.msra.mxu0 %v1149_v31  ;;  %698 = vmatpush1.msra.mxu1 %v1151_v32 }
 0x148   : > { %628 = vmatprep.subr.mxu0 %v1155_v33  ;;  %699 = vmatprep.subr.mxu1 %v1157_v34 }
 0x149   : > { %629 = vmatpush1.msra.mxu0 %v1163_v35  ;;  %700 = vmatpush1.msra.mxu1 %v1165_v36 }
 0x14a   : > { %630 = vmatprep.subr.mxu0 %v1174_v38  ;;  %701 = vmatprep.subr.mxu1 %v1176_v39 }
 0x14b   : > { %631 = vmatpush1.msra.mxu0 %v1180_v40  ;;  %702 = vmatpush1.msra.mxu1 %v1182_v41 }
 0x14c   : > { %632 = vmatprep.subr.mxu0 %v1186_v42  ;;  %703 = vmatprep.subr.mxu1 %v1188_v43 }
 0x14d   : > { %633 = vmatpush1.msra.mxu0 %v1194_v44  ;;  %682 = vmatprep.mubr.f32.mxu0 %v1008_v28 }
 0x14e   : > { %634 = vmatprep.subr.mxu0 %v1205_v47  ;;  %704 = vmatpush1.msra.mxu1 %v1196_v45 }
 0x14f   : > { %635 = vmatpush1.msra.mxu0 %v1211_v49  ;;  %705 = vmatprep.subr.mxu1 %v1207_v48 }
 0x150   : > { %636 = vmatprep.subr.mxu0 %v1217_v51  ;;  %706 = vmatpush1.msra.mxu1 %v1213_v50 }
 0x151   : > { %637 = vmatpush1.msra.mxu0 %v1225_v53  ;;  %707 = vmatprep.subr.mxu1 %v1219_v52 }
 0x152   : > { %638 = vmatprep.subr.mxu0 %v1236_v56  ;;  %708 = vmatpush1.msra.mxu1 %v1227_v54 }
 0x153   : > { %639 = vmatpush1.msra.mxu0 %v1242_v58  ;;  %709 = vmatprep.subr.mxu1 %v1238_v57 }
 0x154   : > { %640 = vmatprep.subr.mxu0 %v1557_v61  ;;  %710 = vmatpush1.msra.mxu1 %v1558_v59  ;;  %v1574_v61 = vld [vmem:[#allocation29_spill] sm:$0xff]  ;;  %v1575_v59 = vld [vmem:[#allocation28_spill] sm:$0xff] }
 0x155   : > { %641 = vmatpush1.msra.mxu0 %v1559_v60  ;;  %711 = vmatprep.subr.mxu1 %v1560_v8  ;;  %v1576_v60 = vld [vmem:[#allocation31_spill] sm:$0xff]  ;;  %v1577_v8 = vld [vmem:[#allocation30_spill] sm:$0xff] }
 0x156   : > { %642 = vmatprep.subr.mxu0 %v1561_v9  ;;  %712 = vmatpush1.msra.mxu1 %v1562_v62  ;;  %v1009_v9 = vmov 0  }
 0x157   : > { %643 = vmatpush1.msra.mxu0 %v1563_v6  ;;  %713 = vmatprep.subr.mxu1 %v1564_v1  ;;  %v790_v62 = vsel %vm789_vm1, 1, %v1009_v9  ;;  %v1578_v6 = vld [vmem:[#allocation32_spill] sm:$0xff]  ;;  %v614_v1 = vld [vmem:[%s613_s19] sm:$0xff] }
 0x158   : > { %644 = vmatprep.subr.mxu0 %v1565_v0  ;;  %714 = vmatpush1.msra.mxu1 %v1566_v7  ;;  %v615_v0 = vld [vmem:[%s613_s19 + $0x8] sm:$0xff] }
 0x159   : > { %645 = vmatpush1.msra.mxu0 %v1567_v46  ;;  %715 = vmatprep.subr.mxu1 %v1568_v55 }
 0x15a   : > { %646 = vmatprep.subr.mxu0 %v1569_v3  ;;  %716 = vmatpush1.msra.mxu1 %v1570_v2 }
 0x15b   : > { %647 = vmatpush1.msra.mxu0 %v1572_v63  ;;  %717 = vmatprep.subr.mxu1 %v1573_v19  ;;  %v616_v19 = vld [vmem:[%s613_s19 + $0x10] sm:$0xff] }
 0x15c   : > { %648 = vmatprep.subr.mxu0 %v1574_v61  ;;  %718 = vmatpush1.msra.mxu1 %v1575_v59 }
 0x15d   : > { %649 = vmatpush1.msra.mxu0 %v1576_v60  ;;  %719 = vmatprep.subr.mxu1 %v1577_v8 }
 0x15e   : > { %683 = vmatmul.mubr.f32.vlgmr.msra.gmra.mxu0 %v994_v4  ;;  %720 = vmatpush1.msra.mxu1 %v1578_v6 }
 0x15f   : > { %753 = vmatprep.mubr.f32.mxu1 %v1008_v28  ;;  %911 = vset.pattern.permute.xlu0 %v1009_v9  ;;  %v617_v28 = vld [vmem:[%s613_s19 + $0x18] sm:$0xff] }
 0x160   : > { %754 = vmatmul.mubr.f32.vlgmr.msra.gmra.mxu1 %v994_v4  ;;  %792 = vperm.xlu0 %911, %v790_v62  }
 0x21e   : > { %v684_v37 = vpop.f32.mrf.mxu0 }
 0x21f   : > { %v760_v7 = vadd.f32 %v684_v37, %v614_v1 }
 0x220   : > { %v686_v46 = vpop.f32.mrf.mxu0  ;;  %v755_v10 = vpop.f32.mrf.mxu1 }
 0x221   : > { %v849_v55 = vmul.f32 -1.442695, %v760_v7  ;;  %v761_v3 = vadd.f32 %v686_v46, %v615_v0  ;;  %v762_v59 = vadd.f32 %v755_v10, %v616_v19  ;;  %v793_v7 = vpop.permute.xlu0 %792 }
 0x222   : > { %v757_v63 = vpop.f32.mrf.mxu1  ;;  %vm794_vm2 = vcmp.eq.s32.totalorder %v793_v7, 1 }
 0x223   : > { %912 = vpow2.f32 %v849_v55  ;;  %v850_v2 = vmul.f32 -1.442695, %v761_v3  ;;  %v763_v61 = vadd.f32 %v757_v63, %v617_v28 }
 0x225   : > { %914 = vpow2.f32 %v850_v2  ;;  %v851_v60 = vmul.f32 -1.442695, %v763_v61 }
 0x226   : > { %916 = vtanh.f32 %v762_v59 }
 0x227   : > { %918 = vpow2.f32 %v851_v60 }
 0x230   : > { %v913_v8 = vpop.eup %912 }
 0x231   : > { %v767_v9 = vadd.f32 1.0, %v913_v8 }
 0x232   : > { %v915_v62 = vpop.eup %914 }
 0x233   : > { %920 = vrcp.f32 %v767_v9  ;;  %v773_v6 = vadd.f32 1.0, %v915_v62  ;;  %v917_v1 = vpop.eup %916 }
 0x234   : > { %v919_v37 = vpop.eup %918 }
 0x235   : > { %922 = vrcp.f32 %v773_v6  ;;  %v780_v55 = vadd.f32 1.0, %v919_v37 }
 0x237   : > { %924 = vrcp.f32 %v780_v55 }
 0x240   : > { %v921_v0 = vpop.eup %920 }
 0x241   : > { %v784_v2 = vmul.f32 %v921_v0, %v917_v1 }
 0x242   : > { %v923_v46 = vpop.eup %922 }
 0x243   : > { %v783_v3 = vmul.f32 %v990_v5, %v923_v46 }
 0x244   : > { %v925_v28 = vpop.eup %924 }
 0x245   : > { %v785_v10 = vadd.f32 %v784_v2, %v783_v3 }
 0x247   : > { %926 = vtanh.f32 %v785_v10  ;;  %v796_v5 = vsel %vm794_vm2, %v785_v10, %v990_v5  }
 0x254   : > { %v927_v63 = vpop.eup %926  ;;  %605 = sbr.rel (!%p602_p7) target bundleno = 318 (0x13e), region = 52 }
 0x255   : > { %v787_v19 = vmul.f32 %v927_v63, %v925_v28 }
 0x257   : > { %v795_v61 = vsel %vm794_vm2, %v787_v19, %v994_v4  }
 0x258   : > { %v1579_v4 = vmov %v795_v61  ;;  %v1580_v19 = vmov (%p602_p7), %v795_v61 }
 0x259 PF:  { %797 = vst [vmem:[#allocation8] sm:$0xff] %v1002_v19  ;;  %s1010_s20 = smov [#allocation8]   ;;  %v1002_v19 = vphi %v1556_v19, %v1580_v19  }
 0x25a   :  { %s804_s21 = sshll.u32 %s1010_s20, 4  ;;  %s805_s21 = int_to_ptr.vmem [resolvable:$true] %s804_s21 }
 0x25b   :  { %s948_s3 = scalar_lea.vmem %s805_s21, 128  ;;  %p953_p9 = scmp.lt.s32.totalorder %s805_s21, %s805_s21 }
 0x25c   :  { %p949_p8 = scmp.ne.s32.totalorder %s805_s21, %s948_s3  ;;  %p954_p10 = scmp.lt.s32.totalorder %s948_s3, %s948_s3 }
 0x25e   :  { %p955_p11 = por %p954_p10, %p953_p9 }
 0x260   :  { %p956_p12 = pnand %p955_p11, %p949_p8 }
 0x262   :  { %959 = shalt.err (!%p956_p12)
}
 0x263   :  { %807 = dma.vmem_to_hbm [thread:$0]  %s805_s21, 128, %s1509_s6, [#allocation7]  }
 0x264   :  { %986 = dma.done.wait [#allocation7], 128  }
 0x265   :  { %987 = vsyncadd [#allocation7], 4294967168 }
 0x266   :  { %811 = vsyncpa [#allocation6], 1 }
 0x267   :  { %812 = vsyncpa [#allocation7], 1 }

</bundles_post_ra>
